<compile_context>
chip_gen: v6e
topology: v6e:2x2x1
jax: 0.10.0
libtpu: 0.0.40
codegen_flags: <defaults>
</compile_context>

<pallas_src>
import jax
import jax.numpy as jnp
from jax.experimental import pallas as pl
from jax.experimental.pallas import tpu as pltpu

_MIN_LANES = 128


def _linear_kernel(w_ref, b_ref, x_ref, o_ref):
    # w_ref, b_ref: (1, 1) scalars in SMEM.
    # x_ref, o_ref: (tr, lanes) lane-dense blocks in VMEM.
    o_ref[...] = x_ref[...] * w_ref[0, 0] + b_ref[0, 0]


def _device_kind():
    try:
        return jax.devices()[0].device_kind.lower()
    except Exception:
        return ""


def _tile_elems_default():
    # Per-generation per-buffer tile budget (f32 elements).
    #   v5e : 16 MiB scoped-VMEM default -> 2 MiB tiles (4 buffers = 8 MiB).
    #   v6e/v7x: 32 MiB scoped default + faster HBM -> 4 MiB tiles (16 MiB),
    #   amortizing the fixed per-grid-step overhead.
    kind = _device_kind()
    if "v5 lite" in kind or "v5e" in kind or "v5litepod" in kind:
        return 512 * 1024          # 2 MiB per buffer
    return 1024 * 1024             # 4 MiB per buffer


def _is_v7x():
    return "v7" in _device_kind()


def _linear_pallas(x, weight, bias, *, tile_elems=None):
    """Lane-dense, row-tiled Pallas path computing y = x * w + b."""
    orig_shape = x.shape
    n = x.size
    if tile_elems is None:
        tile_elems = _tile_elems_default()

    x_flat = x.astype(jnp.float32).reshape(-1)

    # Pick the widest lane count that divides N exactly so the wrapper needs
    # no pad and no output slice (zero extra HBM passes); wider last dim also
    # gives better store streaming.
    lanes = None
    for cand in (1024, 512, 256, 128):
        if n % cand == 0:
            lanes = cand
            break
    padded_n = n
    if lanes is None:
        # Ragged N (< multiple of 128): pad to the next 128 boundary.  This is
        # the only case that costs an extra HBM pass, and it is guarded.
        lanes = _MIN_LANES
        padded_n = pl.cdiv(n, lanes) * lanes
        x_flat = jnp.pad(x_flat, (0, padded_n - n))

    rows = padded_n // lanes
    x2 = x_flat.reshape(rows, lanes)

    # Tile rows: multiple of 8 (sublane constraint) targeting ~tile_elems
    # elements per block.  The grid handles a ragged final block itself.
    tr_target = max(8, (tile_elems // lanes) // 8 * 8)
    tr = rows if rows <= tr_target else tr_target
    grid = pl.cdiv(rows, tr)

    w_smem = jnp.asarray(weight, jnp.float32).reshape(1, 1)
    b_smem = jnp.asarray(bias, jnp.float32).reshape(1, 1)

    def call(row_semantics):
        return pl.pallas_call(
            _linear_kernel,
            out_shape=jax.ShapeDtypeStruct((rows, lanes), jnp.float32),
            grid=(grid,),
            in_specs=[
                pl.BlockSpec(memory_space=pltpu.MemorySpace.SMEM),   # weight
                pl.BlockSpec(memory_space=pltpu.MemorySpace.SMEM),   # bias
                pl.BlockSpec((tr, lanes), lambda i: (i, 0)),          # x tile
            ],
            out_specs=pl.BlockSpec((tr, lanes), lambda i: (i, 0)),
            compiler_params=pltpu.CompilerParams(
                dimension_semantics=(row_semantics,),
            ),
        )(w_smem, b_smem, x2)

    # v7x has two TensorCores per chip: split the row grid across them so each
    # TC drives its own DMA queues.  Anywhere else, "parallel" is sufficient.
    if _is_v7x() and grid % 2 == 0:
        try:
            out2 = call(pltpu.CORE_PARALLEL)
        except Exception:
            out2 = call("parallel")
    else:
        out2 = call("parallel")

    if padded_n != n:
        return out2.reshape(-1)[:n].reshape(orig_shape)
    return out2.reshape(orig_shape)


def linear_1_1(x, weight, bias, *, min_pallas_elems=64 * 1024, tile_elems=None):
    """Pallas equivalent of torch.nn.Linear(1, 1).forward.

    Args:
      x:      (N, 1) float32
      weight: (1, 1) float32   (PyTorch layout: (out_features, in_features))
      bias:   (1,)   float32
      min_pallas_elems: below this, use the fused jnp affine (already a single
        HBM pass; kernel launch overhead would dominate). 0 forces the kernel.
      tile_elems: override the per-buffer tile size (f32 elements).
    Returns:
      (N, 1) float32
    """
    w = jnp.asarray(weight, jnp.float32).reshape(())
    b = jnp.asarray(bias, jnp.float32).reshape(())
    if x.size < min_pallas_elems:
        return x.astype(jnp.float32) * w + b
    return _linear_pallas(x, weight, bias, tile_elems=tile_elems)


if __name__ == "__main__":
    key = jax.random.PRNGKey(0)
    kx, kw, kb, kx2, kx3, kx4 = jax.random.split(key, 6)

    # Deterministic parameters (PyTorch Linear(1,1): W (1,1), b (1,)).
    weight = jax.random.uniform(kw, (1, 1), dtype=jnp.float32, minval=-1.0, maxval=1.0)
    bias = jax.random.uniform(kb, (1,), dtype=jnp.float32, minval=-1.0, maxval=1.0)

    def ref_fn(x):
        return x @ weight.T + bias

    # 1) Tiny batch, force the Pallas path (pads 8 -> 128, single block).
    x1 = jax.random.normal(kx, (8, 1), dtype=jnp.float32)
    out1 = jax.block_until_ready(linear_1_1(x1, weight, bias, min_pallas_elems=0))
    assert out1.shape == (8, 1)
    assert jnp.allclose(out1, ref_fn(x1), atol=1e-6)

    # 2) N = 1152 (multiple of 128 but not 256) with a tiny tile budget:
    #    lanes=128, rows=9, tr=8 -> grid=(2,) with a ragged final block and
    #    NO wrapper pad/slice.  Exercises the pipelined multi-step path.
    x2 = jax.random.normal(kx2, (1152, 1), dtype=jnp.float32)
    out2 = jax.block_until_ready(
        linear_1_1(x2, weight, bias, min_pallas_elems=0, tile_elems=1024))
    assert out2.shape == (1152, 1)
    assert jnp.allclose(out2, ref_fn(x2), atol=1e-6)

    # 3) N = 1000 (not a multiple of 128): guarded pad + slice path.
    x3 = jax.random.normal(kx3, (1000, 1), dtype=jnp.float32)
    out3 = jax.block_until_ready(linear_1_1(x3, weight, bias, min_pallas_elems=0))
    assert out3.shape == (1000, 1)
    assert jnp.allclose(out3, ref_fn(x3), atol=1e-6)

    # 4) N = 4096: wide-lane (1024) copy-free path with default tile budget.
    x4 = jax.random.normal(kx4, (4096, 1), dtype=jnp.float32)
    out4 = jax.block_until_ready(linear_1_1(x4, weight, bias, min_pallas_elems=0))
    assert out4.shape == (4096, 1)
    assert jnp.allclose(out4, ref_fn(x4), atol=1e-6)

    # 5) Small-N fast path (fused jnp fallback) still matches.
    out5 = jax.block_until_ready(linear_1_1(x1, weight, bias))
    assert jnp.allclose(out5, ref_fn(x1), atol=1e-6)

    print("KERNEL_OK")
</pallas_src>

<mosaic_0001>
module attributes {stable_mosaic.version = 11 : i64} {
  func.func @_linear_kernel(%arg0: i32, %arg1: memref<1x1xf32, #tpu.memory_space<smem>>, %arg2: memref<1x1xf32, #tpu.memory_space<smem>>, %arg3: memref<1x128xf32, #tpu.memory_space<vmem>>, %arg4: memref<1x128xf32, #tpu.memory_space<vmem>>) attributes {dimension_semantics = [#tpu.dimension_semantics<parallel>], iteration_bounds = array<i64: 1>, scalar_prefetch = 0 : i64, scratch_operands = 0 : i64, tpu.core_type = #tpu.core_type<tc>, window_params = [{transform_indices = @transform_0, window_bounds = array<i64: 1, 1>}, {transform_indices = @transform_1, window_bounds = array<i64: 1, 1>}, {transform_indices = @transform_2, window_bounds = array<i64: 1, 128>}, {transform_indices = @transform_3, window_bounds = array<i64: 1, 128>}]} {
    %c0 = arith.constant 0 : index
    %c0_0 = arith.constant 0 : index
    %0 = vector.load %arg3[%c0, %c0_0] : memref<1x128xf32, #tpu.memory_space<vmem>>, vector<1x128xf32>
    %c0_1 = arith.constant 0 : index
    %c0_2 = arith.constant 0 : index
    %1 = memref.load %arg1[%c0_1, %c0_2] : memref<1x1xf32, #tpu.memory_space<smem>>
    %2 = vector.broadcast %1 : f32 to vector<1x128xf32>
    %3 = arith.mulf %0, %2 : vector<1x128xf32>
    %c0_3 = arith.constant 0 : index
    %c0_4 = arith.constant 0 : index
    %4 = memref.load %arg2[%c0_3, %c0_4] : memref<1x1xf32, #tpu.memory_space<smem>>
    %5 = vector.broadcast %4 : f32 to vector<1x128xf32>
    %6 = arith.addf %3, %5 : vector<1x128xf32>
    %c0_5 = arith.constant 0 : index
    %c0_6 = arith.constant 0 : index
    %7 = vector.load %arg4[%c0_5, %c0_6] : memref<1x128xf32, #tpu.memory_space<vmem>>, vector<1x128xf32>
    tpu.vector_store %arg4[%c0_5, %c0_6], %6 {strides = array<i32>} : memref<1x128xf32, #tpu.memory_space<vmem>>, vector<1x128xf32>,
    return
  }
  func.func @transform_0(%arg0: i32) -> (i32, i32) {
    %c0_i32 = arith.constant 0 : i32
    %c0_i32_0 = arith.constant 0 : i32
    %c0_i32_1 = arith.constant 0 : i32
    return %c0_i32, %c0_i32_0 : i32, i32
  }
  func.func @transform_1(%arg0: i32) -> (i32, i32) {
    %c0_i32 = arith.constant 0 : i32
    %c0_i32_0 = arith.constant 0 : i32
    %c0_i32_1 = arith.constant 0 : i32
    return %c0_i32, %c0_i32_0 : i32, i32
  }
  func.func @transform_2(%arg0: i32) -> (i32, i32) {
    %c0_i32 = arith.constant 0 : i32
    %c0_i32_0 = arith.constant 0 : i32
    return %arg0, %c0_i32 : i32, i32
  }
  func.func @transform_3(%arg0: i32) -> (i32, i32) {
    %c0_i32 = arith.constant 0 : i32
    %c0_i32_0 = arith.constant 0 : i32
    return %arg0, %c0_i32 : i32, i32
  }
}

</mosaic_0001>

<bundles_post_ra>
// kernel: tpu_custom_call.1
= control target key start
LH: loop header
LB: loop body
LE: loop exit
PB: predicated region body
PF: predicated region fallthrough
CT: control target
= control target key end

     0   :  { %s95_s0 = inlined_call_operand.<no memory space> [shape: f32[1,1], index: 0, kind: input, shape index: {}]   ;;  %s96_s1 = inlined_call_operand.<no memory space> [shape: f32[1,1], index: 1, kind: input, shape index: {}]   ;;  %s97_s2 = inlined_call_operand.vmem [shape: f32[1,128], index: 2, kind: input, shape index: {}]   ;;  %s98_s3 = inlined_call_operand.hbm [shape: f32[1,128], index: 3, kind: output, shape index: {}]  }
   0x1   :  { %v17_v0 = vld [vmem:[%s97_s2] sm:$0x1]  ;;  %v19_v1 = vstv %s95_s0  ;;  %v22_v2 = vstv %s96_s1 }
   0x2   :  { %10 = vsyncpa [#allocation5], 0  ;;  %v20_v3 = vmul.f32 %v19_v1, %v17_v0  ;;  %s62_s18 = smov [#allocation4]  }
   0x3   :  { %s31_s19 = sshll.u32 %s62_s18, 4  ;;  %s32_s19 = int_to_ptr.vmem [resolvable:$true] %s31_s19 }
   0x4   :  { %v23_v4 = vadd.f32 %v22_v2, %v20_v3  ;;  %s40_s20 = scalar_lea.vmem %s32_s19, 16  ;;  %s44_s21 = scalar_lea.vmem %s32_s19, 32 }
   0x5   :  { %p41_p0 = scmp.ne.s32.totalorder %s32_s19, %s40_s20  ;;  %p45_p1 = scmp.lt.s32.totalorder %s32_s19, %s32_s19 }
   0x6   :  { %24 = vst [vmem:[#allocation4] sm:$0x1] %v23_v4  ;;  %p46_p2 = scmp.lt.s32.totalorder %s44_s21, %s40_s20 }
   0x8   :  { %p47_p3 = por %p46_p2, %p45_p1 }
   0xa   :  { %p48_p4 = pnand %p47_p3, %p41_p0 }
   0xc   :  { %51 = shalt.err (!%p48_p4)
}
   0xd   :  { %34 = dma.vmem_to_hbm [thread:$0]  %s32_s19, 16, %s98_s3, [#allocation5]  }
   0xe   :  { %60 = dma.done.wait [#allocation5], 16  }
   0xf   :  { %61 = vsyncadd [#allocation5], 4294967280 }
  0x10   :  { %38 = vsyncpa [#allocation5], 1 }

</bundles_post_ra>
